<compile_context>
chip_gen: v7x
topology: tpu7x:2x2x1
jax: 0.10.0
libtpu: 0.0.40
codegen_flags: <defaults>
</compile_context>

<pallas_src>
import functools

import jax
import jax.numpy as jnp
from jax.experimental import pallas as pl
from jax.experimental.pallas import tpu as pltpu


# ----------------------------- kernel bodies --------------------------------


def _gate_compute(rep_ref, ctx_ref, wp_ref, wg_ref, prm_ref, ndiff_ref,
                  *, inv_tau, eps, hard):
    """Shared body: cs head (Linear + LN + ReLU + 2-class gumbel softmax) + gating.

    Returns (rep_p, rep_g) in f32. Elementwise math stays f32 (v5e VPU/EUP have no
    bf16); only the MXU operands are bf16.
    """
    # ---- cs: Linear(C -> 2H), as two lane-dense [C, H] banks ----
    ctx = ctx_ref[...].astype(jnp.bfloat16)                  # MXU-native operand
    xp = jnp.dot(ctx, wp_ref[...], preferred_element_type=jnp.float32)
    xg = jnp.dot(ctx, wg_ref[...], preferred_element_type=jnp.float32)

    prm = prm_ref[...]                                       # [6, H] f32
    b_p, b_g = prm[0:1], prm[1:2]
    g_p, g_g = prm[2:3], prm[3:4]
    be_p, be_g = prm[4:5], prm[5:6]

    xp = xp + b_p
    xg = xg + b_g

    # ---- cs: LayerNorm over the joint 2H feature dim ----
    # Centered (two-pass) statistics: the data is VMEM/vreg-resident, so the second
    # pass is pure VPU work and avoids E[x^2]-E[x]^2 cancellation.
    inv_n = 1.0 / float(2 * xp.shape[-1])
    mean = (jnp.sum(xp, axis=-1, keepdims=True)
            + jnp.sum(xg, axis=-1, keepdims=True)) * inv_n
    dp = xp - mean
    dg = xg - mean
    var = (jnp.sum(dp * dp, axis=-1, keepdims=True)
           + jnp.sum(dg * dg, axis=-1, keepdims=True)) * inv_n
    inv_std = jax.lax.rsqrt(var + eps)
    yp = dp * inv_std * g_p + be_p
    yg = dg * inv_std * g_g + be_g

    # ---- cs: ReLU ----
    yp = jnp.maximum(yp, 0.0)
    yg = jnp.maximum(yg, 0.0)

    # ---- cs: gumbel_softmax over the 2-class axis of view(B, 2, H) ----
    # Only the class difference matters: d = (l_p + n_p - l_g - n_g) / tau; the noise
    # stream is pre-reduced to n_p - n_g (a Logistic(0,1) sample) of shape [B, H].
    d = (yp - yg + ndiff_ref[...].astype(jnp.float32)) * inv_tau
    if hard:
        pm = jnp.where(d >= 0.0, 1.0, 0.0)                   # straight-through fwd value
    else:
        pm = pl.reciprocal(1.0 + jnp.exp(-d), approx=True)   # exp + recip on the EUP slot

    # ---- Gate: rep*pm, rep*gm with gm = 1 - pm folded as rep - rep_p (exact) ----
    rep = rep_ref[...].astype(jnp.float32)
    rep_p = rep * pm
    rep_g = rep - rep_p
    return rep_p, rep_g


def _gate_kernel_split(rep_ref, ctx_ref, wp_ref, wg_ref, prm_ref, ndiff_ref,
                       out_p_ref, out_g_ref, *, inv_tau, eps, hard):
    rep_p, rep_g = _gate_compute(rep_ref, ctx_ref, wp_ref, wg_ref, prm_ref,
                                 ndiff_ref, inv_tau=inv_tau, eps=eps, hard=hard)
    out_p_ref[...] = rep_p.astype(out_p_ref.dtype)
    out_g_ref[...] = rep_g.astype(out_g_ref.dtype)


def _gate_kernel_packed(rep_ref, ctx_ref, wp_ref, wg_ref, prm_ref, ndiff_ref,
                        out_ref, *, inv_tau, eps, hard):
    rep_p, rep_g = _gate_compute(rep_ref, ctx_ref, wp_ref, wg_ref, prm_ref,
                                 ndiff_ref, inv_tau=inv_tau, eps=eps, hard=hard)
    # one lane-dense [TB, 2H] store -> single output DMA stream, unmasked vst
    out_ref[...] = jnp.concatenate([rep_p, rep_g], axis=-1).astype(out_ref.dtype)


# ----------------------------- tiling policy ---------------------------------


def _vmem_capacity_bytes():
    try:
        return int(pltpu.get_tpu_info().vmem_capacity_bytes)
    except Exception:
        return 64 << 20            # conservative default: v7x per-TensorCore VMEM


def _vmem_limit_bytes():
    # ~48 MiB on v7x (64 MiB physical), ~96 MiB on v5e/v6e (128 MiB physical)
    return min(_vmem_capacity_bytes() * 3 // 4, 96 << 20)


def _pick_batch_tile(B, C, H, *, rep_isz, ctx_isz, noise_isz, out_isz):
    """Per-generation VMEM-budgeted batch tile.

    Accounts for the double-buffered resident bf16 weight banks and the f32
    intermediates the kernel body materializes, so a tile that fits v5e/v6e
    (128 MiB VMEM) does not spill or OOM on v7x (64 MiB).
    """
    budget = min(_vmem_capacity_bytes() * 3 // 8, 48 << 20)   # ~24 MiB v7x, ~48 MiB v5e/v6e

    # VMEM-resident params (BlockSpec inputs are double-buffered even with a
    # constant index_map): two bf16 [C, H] weight banks + one f32 [6, H] block.
    resident = 2 * (2 * C * H * 2) + 2 * (6 * H * 4)
    # Per-row double-buffered HBM streams: rep + context + noise_diff + outputs.
    streamed = 2 * (H * rep_isz + C * ctx_isz + H * noise_isz + 2 * H * out_isz)
    # Per-row f32 intermediates the body materializes (~3x the 2H working width).
    temporaries = 3 * (2 * H) * 4
    per_row = streamed + temporaries

    tb = (budget - resident) // max(per_row, 1)
    tb = max(8, min(4096, int(tb)))
    tb = (tb // 8) * 8
    if B > 8:
        # Guarantee >=2 grid steps so the "parallel" batch axis shards across
        # v7x's two TensorCores (harmless extra step on single-TC v5e/v6e).
        half = ((B + 1) // 2 + 7) // 8 * 8
        tb = min(tb, half)
    return B if B <= tb else tb


# ----------------------------- wrapper ---------------------------------------


def gate_forward(rep, context, w, b, gamma, beta, noise_diff,
                 tau=1.0, hard=False, flag=0):
    """Pallas implementation of FedCP Gate.forward.

    rep:          [B, H]
    context:      [B, C]
    w:            [C, 2H]   (transposed from torch's [2H, C] Linear weight)
    b,gamma,beta: [2H]      Linear bias / LayerNorm weight / LayerNorm bias
    noise_diff:   [B, H]    precomputed gumbel-noise difference n_p - n_g
                            (Logistic(0,1); only the 2-class difference matters).
    """
    B, H = rep.shape
    C = context.shape[1]
    H2 = 2 * H
    assert w.shape == (C, H2)
    assert noise_diff.shape == (B, H)

    # Lane-dense p/g parameter banks; bf16 weights for the MXU, f32 small vectors.
    w_p = w[:, :H].astype(jnp.bfloat16)
    w_g = w[:, H:].astype(jnp.bfloat16)
    prm = jnp.stack([b[:H], b[H:], gamma[:H], gamma[H:], beta[:H], beta[H:]],
                    axis=0).astype(jnp.float32)               # [6, H]

    out_dtype = rep.dtype
    TB = _pick_batch_tile(
        B, C, H,
        rep_isz=jnp.dtype(rep.dtype).itemsize,
        ctx_isz=jnp.dtype(context.dtype).itemsize,
        noise_isz=jnp.dtype(noise_diff.dtype).itemsize,
        out_isz=jnp.dtype(out_dtype).itemsize)
    grid = (pl.cdiv(B, TB),)

    kernel_kwargs = dict(inv_tau=float(1.0 / tau), eps=1e-5, hard=bool(hard))

    in_specs = [
        pl.BlockSpec((TB, H), lambda i: (i, 0)),    # rep          (batch-tiled)
        pl.BlockSpec((TB, C), lambda i: (i, 0)),    # context      (batch-tiled)
        pl.BlockSpec((C, H), lambda i: (0, 0)),     # w_p          (VMEM-resident)
        pl.BlockSpec((C, H), lambda i: (0, 0)),     # w_g          (VMEM-resident)
        pl.BlockSpec((6, H), lambda i: (0, 0)),     # b/gamma/beta (VMEM-resident)
        pl.BlockSpec((TB, H), lambda i: (i, 0)),    # noise diff   (batch-tiled)
    ]

    cost = pl.CostEstimate(
        flops=2 * B * C * H2 + 24 * B * H,
        transcendentals=(0 if hard else 2 * B * H),
        bytes_accessed=(B * H * jnp.dtype(rep.dtype).itemsize
                        + B * C * jnp.dtype(context.dtype).itemsize
                        + B * H * jnp.dtype(noise_diff.dtype).itemsize
                        + 2 * B * H * jnp.dtype(out_dtype).itemsize
                        + 2 * C * H * 2 + 6 * H * 4),
    )

    compiler_params = pltpu.CompilerParams(
        dimension_semantics=("parallel",),          # independent batch tiles -> 2 TCs on v7x
        vmem_limit_bytes=_vmem_limit_bytes(),
    )

    args = (rep, context, w_p, w_g, prm, noise_diff)

    if H % 128 == 0:
        # H-wide stores are already lane-dense: emit the two outputs directly.
        rep_p, rep_g = pl.pallas_call(
            functools.partial(_gate_kernel_split, **kernel_kwargs),
            out_shape=(jax.ShapeDtypeStruct((B, H), out_dtype),
                       jax.ShapeDtypeStruct((B, H), out_dtype)),
            grid=grid,
            in_specs=in_specs,
            out_specs=(pl.BlockSpec((TB, H), lambda i: (i, 0)),
                       pl.BlockSpec((TB, H), lambda i: (i, 0))),
            compiler_params=compiler_params,
            cost_estimate=cost,
        )(*args)
    else:
        # Pack both outputs into one lane-dense [B, 2H] slab and split in the wrapper.
        packed = pl.pallas_call(
            functools.partial(_gate_kernel_packed, **kernel_kwargs),
            out_shape=jax.ShapeDtypeStruct((B, H2), out_dtype),
            grid=grid,
            in_specs=in_specs,
            out_specs=pl.BlockSpec((TB, H2), lambda i: (i, 0)),
            compiler_params=compiler_params,
            cost_estimate=cost,
        )(*args)
        rep_p, rep_g = packed[:, :H], packed[:, H:]

    # Python-side `flag` dispatch (matches Gate.forward return structure).
    # TODO(synk): torch's self.pm/self.gm list bookkeeping is stateful Python-side
    # accumulation with no compute; it stays outside the kernel.
    if flag == 0:
        return rep_p, rep_g
    elif flag == 1:
        return rep_p
    else:
        return rep_g


# ----------------------------- demo / self-test -------------------------------


if __name__ == "__main__":
    B, C, H = 8, 32, 32   # batch, context dim, hidden (rep) dim
    H2 = 2 * H

    key = jax.random.PRNGKey(0)
    k_rep, k_ctx, k_w, k_b, k_u1, k_u2 = jax.random.split(key, 6)

    rep = jax.random.normal(k_rep, (B, H), dtype=jnp.float32)
    context = jax.random.normal(k_ctx, (B, C), dtype=jnp.float32)

    # Deterministic "cs" (ConditionalSelection) parameters: Linear(C -> 2H) + LayerNorm(2H).
    w = jax.random.normal(k_w, (C, H2), dtype=jnp.float32) * (1.0 / jnp.sqrt(C))
    b = jax.random.normal(k_b, (H2,), dtype=jnp.float32) * 0.01
    gamma = jnp.ones((H2,), dtype=jnp.float32)    # torch LayerNorm default init
    beta = jnp.zeros((H2,), dtype=jnp.float32)

    # Deterministic gumbel noise difference: g_p - g_g with g = -log(-log(U)).
    u1 = jax.random.uniform(k_u1, (B, H), jnp.float32, minval=1e-6, maxval=1.0 - 1e-6)
    u2 = jax.random.uniform(k_u2, (B, H), jnp.float32, minval=1e-6, maxval=1.0 - 1e-6)
    g1 = -jnp.log(-jnp.log(u1))
    g2 = -jnp.log(-jnp.log(u2))
    noise_diff = g1 - g2

    rep_p, rep_g = gate_forward(rep, context, w, b, gamma, beta, noise_diff,
                                tau=1.0, hard=False, flag=0)
    jax.block_until_ready((rep_p, rep_g))

    # Pure-JAX reference with torch semantics (f32 throughout).
    x = context @ w + b
    mean = x.mean(-1, keepdims=True)
    var = ((x - mean) ** 2).mean(-1, keepdims=True)
    x = (x - mean) / jnp.sqrt(var + 1e-5) * gamma + beta
    x = jnp.maximum(x, 0.0)
    lp, lg = x[:, :H], x[:, H:]
    pm_ref = jax.nn.sigmoid((lp + g1) - (lg + g2))
    ref_p = rep * pm_ref
    ref_g = rep * (1.0 - pm_ref)

    assert rep_p.shape == (B, H) and rep_g.shape == (B, H)
    # pm + gm = 1 elementwise  =>  rep_p + rep_g == rep (exact by construction in f32)
    assert jnp.allclose(rep_p + rep_g, rep, atol=1e-5)
    # match the f32 reference (bf16 MXU operands + approx reciprocal -> small tolerance)
    assert jnp.allclose(rep_p, ref_p, atol=2e-2)
    assert jnp.allclose(rep_g, ref_g, atol=2e-2)
    assert bool(jnp.all(jnp.isfinite(rep_p))) and bool(jnp.all(jnp.isfinite(rep_g)))

    print("KERNEL_OK")
</pallas_src>

<mosaic_0001>
module attributes {stable_mosaic.version = 11 : i64} {
  func.func @_gate_kernel_packed(%arg0: i32, %arg1: memref<8x32xf32, #tpu.memory_space<vmem>>, %arg2: memref<8x32xf32, #tpu.memory_space<vmem>>, %arg3: memref<32x32xbf16, #tpu.memory_space<vmem>>, %arg4: memref<32x32xbf16, #tpu.memory_space<vmem>>, %arg5: memref<6x32xf32, #tpu.memory_space<vmem>>, %arg6: memref<8x32xf32, #tpu.memory_space<vmem>>, %arg7: memref<8x64xf32, #tpu.memory_space<vmem>>) attributes {dimension_semantics = [#tpu.dimension_semantics<parallel>], iteration_bounds = array<i64: 1>, scalar_prefetch = 0 : i64, scratch_operands = 0 : i64, tpu.core_type = #tpu.core_type<tc>, window_params = [{transform_indices = @transform_0, window_bounds = array<i64: 8, 32>}, {transform_indices = @transform_1, window_bounds = array<i64: 8, 32>}, {pipeline_mode = #tpu.pipeline_mode<synchronous>, transform_indices = @transform_2, window_bounds = array<i64: 32, 32>}, {pipeline_mode = #tpu.pipeline_mode<synchronous>, transform_indices = @transform_3, window_bounds = array<i64: 32, 32>}, {pipeline_mode = #tpu.pipeline_mode<synchronous>, transform_indices = @transform_4, window_bounds = array<i64: 6, 32>}, {transform_indices = @transform_5, window_bounds = array<i64: 8, 32>}, {transform_indices = @transform_6, window_bounds = array<i64: 8, 64>}]} {
    %c0 = arith.constant 0 : index
    %c0_0 = arith.constant 0 : index
    %0 = vector.load %arg2[%c0, %c0_0] : memref<8x32xf32, #tpu.memory_space<vmem>>, vector<8x32xf32>
    %1 = arith.truncf %0 : vector<8x32xf32> to vector<8x32xbf16>
    %c0_1 = arith.constant 0 : index
    %c0_2 = arith.constant 0 : index
    %2 = vector.load %arg3[%c0_1, %c0_2] : memref<32x32xbf16, #tpu.memory_space<vmem>>, vector<32x32xbf16>
    %cst = arith.constant dense<0.000000e+00> : vector<8x32xf32>
    %3 = tpu.matmul %1, %2, %cst {dimension_numbers = #tpu.dot_dimension_numbers<[1], [0], [0], [1], [0, 0, 1, 1], [], []>} : vector<8x32xbf16>, vector<32x32xbf16>, vector<8x32xf32> -> vector<8x32xf32>
    %c0_3 = arith.constant 0 : index
    %c0_4 = arith.constant 0 : index
    %4 = vector.load %arg4[%c0_3, %c0_4] : memref<32x32xbf16, #tpu.memory_space<vmem>>, vector<32x32xbf16>
    %cst_5 = arith.constant dense<0.000000e+00> : vector<8x32xf32>
    %5 = tpu.matmul %1, %4, %cst_5 {dimension_numbers = #tpu.dot_dimension_numbers<[1], [0], [0], [1], [0, 0, 1, 1], [], []>} : vector<8x32xbf16>, vector<32x32xbf16>, vector<8x32xf32> -> vector<8x32xf32>
    %c0_6 = arith.constant 0 : index
    %c0_7 = arith.constant 0 : index
    %6 = vector.load %arg5[%c0_6, %c0_7] : memref<6x32xf32, #tpu.memory_space<vmem>>, vector<6x32xf32>
    %7 = vector.extract_strided_slice %6 {offsets = [0, 0], sizes = [1, 32], strides = [1, 1]} : vector<6x32xf32> to vector<1x32xf32>
    %8 = vector.extract_strided_slice %6 {offsets = [1, 0], sizes = [1, 32], strides = [1, 1]} : vector<6x32xf32> to vector<1x32xf32>
    %9 = vector.extract_strided_slice %6 {offsets = [2, 0], sizes = [1, 32], strides = [1, 1]} : vector<6x32xf32> to vector<1x32xf32>
    %10 = vector.extract_strided_slice %6 {offsets = [3, 0], sizes = [1, 32], strides = [1, 1]} : vector<6x32xf32> to vector<1x32xf32>
    %11 = vector.extract_strided_slice %6 {offsets = [4, 0], sizes = [1, 32], strides = [1, 1]} : vector<6x32xf32> to vector<1x32xf32>
    %12 = vector.extract_strided_slice %6 {offsets = [5, 0], sizes = [1, 32], strides = [1, 1]} : vector<6x32xf32> to vector<1x32xf32>
    %13 = vector.broadcast %7 : vector<1x32xf32> to vector<8x32xf32>
    %14 = arith.addf %3, %13 : vector<8x32xf32>
    %15 = vector.broadcast %8 : vector<1x32xf32> to vector<8x32xf32>
    %16 = arith.addf %5, %15 : vector<8x32xf32>
    %cst_8 = arith.constant dense<0.000000e+00> : vector<8xf32>
    %17 = vector.multi_reduction <add>, %14, %cst_8 [1] : vector<8x32xf32> to vector<8xf32>
    %18 = vector.shape_cast %17 : vector<8xf32> to vector<8x1xf32>
    %cst_9 = arith.constant dense<0.000000e+00> : vector<8xf32>
    %19 = vector.multi_reduction <add>, %16, %cst_9 [1] : vector<8x32xf32> to vector<8xf32>
    %20 = vector.shape_cast %19 : vector<8xf32> to vector<8x1xf32>
    %21 = arith.addf %18, %20 : vector<8x1xf32>
    %cst_10 = arith.constant 1.562500e-02 : f32
    %22 = vector.broadcast %cst_10 : f32 to vector<8x1xf32>
    %23 = arith.mulf %21, %22 : vector<8x1xf32>
    %24 = vector.broadcast %23 : vector<8x1xf32> to vector<8x32xf32>
    %25 = arith.subf %14, %24 : vector<8x32xf32>
    %26 = vector.broadcast %23 : vector<8x1xf32> to vector<8x32xf32>
    %27 = arith.subf %16, %26 : vector<8x32xf32>
    %28 = arith.mulf %25, %25 : vector<8x32xf32>
    %cst_11 = arith.constant dense<0.000000e+00> : vector<8xf32>
    %29 = vector.multi_reduction <add>, %28, %cst_11 [1] : vector<8x32xf32> to vector<8xf32>
    %30 = vector.shape_cast %29 : vector<8xf32> to vector<8x1xf32>
    %31 = arith.mulf %27, %27 : vector<8x32xf32>
    %cst_12 = arith.constant dense<0.000000e+00> : vector<8xf32>
    %32 = vector.multi_reduction <add>, %31, %cst_12 [1] : vector<8x32xf32> to vector<8xf32>
    %33 = vector.shape_cast %32 : vector<8xf32> to vector<8x1xf32>
    %34 = arith.addf %30, %33 : vector<8x1xf32>
    %cst_13 = arith.constant 1.562500e-02 : f32
    %35 = vector.broadcast %cst_13 : f32 to vector<8x1xf32>
    %36 = arith.mulf %34, %35 : vector<8x1xf32>
    %cst_14 = arith.constant 9.99999974E-6 : f32
    %37 = vector.broadcast %cst_14 : f32 to vector<8x1xf32>
    %38 = arith.addf %36, %37 : vector<8x1xf32>
    %39 = math.rsqrt %38 : vector<8x1xf32>
    %40 = vector.broadcast %39 : vector<8x1xf32> to vector<8x32xf32>
    %41 = arith.mulf %25, %40 : vector<8x32xf32>
    %42 = vector.broadcast %9 : vector<1x32xf32> to vector<8x32xf32>
    %43 = arith.mulf %41, %42 : vector<8x32xf32>
    %44 = vector.broadcast %11 : vector<1x32xf32> to vector<8x32xf32>
    %45 = arith.addf %43, %44 : vector<8x32xf32>
    %46 = vector.broadcast %39 : vector<8x1xf32> to vector<8x32xf32>
    %47 = arith.mulf %27, %46 : vector<8x32xf32>
    %48 = vector.broadcast %10 : vector<1x32xf32> to vector<8x32xf32>
    %49 = arith.mulf %47, %48 : vector<8x32xf32>
    %50 = vector.broadcast %12 : vector<1x32xf32> to vector<8x32xf32>
    %51 = arith.addf %49, %50 : vector<8x32xf32>
    %cst_15 = arith.constant 0.000000e+00 : f32
    %52 = vector.broadcast %cst_15 : f32 to vector<8x32xf32>
    %53 = arith.maximumf %45, %52 : vector<8x32xf32>
    %cst_16 = arith.constant 0.000000e+00 : f32
    %54 = vector.broadcast %cst_16 : f32 to vector<8x32xf32>
    %55 = arith.maximumf %51, %54 : vector<8x32xf32>
    %56 = arith.subf %53, %55 : vector<8x32xf32>
    %c0_17 = arith.constant 0 : index
    %c0_18 = arith.constant 0 : index
    %57 = vector.load %arg6[%c0_17, %c0_18] : memref<8x32xf32, #tpu.memory_space<vmem>>, vector<8x32xf32>
    %58 = arith.addf %56, %57 : vector<8x32xf32>
    %cst_19 = arith.constant 1.000000e+00 : f32
    %59 = vector.broadcast %cst_19 : f32 to vector<8x32xf32>
    %60 = arith.mulf %58, %59 : vector<8x32xf32>
    %cst_20 = arith.constant 0.000000e+00 : f32
    %61 = vector.broadcast %cst_20 : f32 to vector<8x32xf32>
    %62 = arith.subf %61, %60 : vector<8x32xf32>
    %63 = math.exp %62 : vector<8x32xf32>
    %cst_21 = arith.constant 1.000000e+00 : f32
    %64 = vector.broadcast %cst_21 : f32 to vector<8x32xf32>
    %65 = arith.addf %64, %63 : vector<8x32xf32>
    %66 = tpu.reciprocal %65 {approx = true} : vector<8x32xf32> -> vector<8x32xf32>
    %c0_22 = arith.constant 0 : index
    %c0_23 = arith.constant 0 : index
    %67 = vector.load %arg1[%c0_22, %c0_23] : memref<8x32xf32, #tpu.memory_space<vmem>>, vector<8x32xf32>
    %68 = arith.mulf %67, %66 : vector<8x32xf32>
    %69 = arith.subf %67, %68 : vector<8x32xf32>
    %70 = tpu.concatenate %68, %69 in 1 : vector<8x32xf32>, vector<8x32xf32> -> vector<8x64xf32>
    %c0_24 = arith.constant 0 : index
    %c0_25 = arith.constant 0 : index
    %71 = vector.load %arg7[%c0_24, %c0_25] : memref<8x64xf32, #tpu.memory_space<vmem>>, vector<8x64xf32>
    tpu.vector_store %arg7[%c0_24, %c0_25], %70 {strides = array<i32>} : memref<8x64xf32, #tpu.memory_space<vmem>>, vector<8x64xf32>,
    return
  }
  func.func @transform_0(%arg0: i32) -> (i32, i32) {
    %c0_i32 = arith.constant 0 : i32
    %c0_i32_0 = arith.constant 0 : i32
    return %arg0, %c0_i32 : i32, i32
  }
  func.func @transform_1(%arg0: i32) -> (i32, i32) {
    %c0_i32 = arith.constant 0 : i32
    %c0_i32_0 = arith.constant 0 : i32
    return %arg0, %c0_i32 : i32, i32
  }
  func.func @transform_2(%arg0: i32) -> (i32, i32) {
    %c0_i32 = arith.constant 0 : i32
    %c0_i32_0 = arith.constant 0 : i32
    %c0_i32_1 = arith.constant 0 : i32
    return %c0_i32, %c0_i32_0 : i32, i32
  }
  func.func @transform_3(%arg0: i32) -> (i32, i32) {
    %c0_i32 = arith.constant 0 : i32
    %c0_i32_0 = arith.constant 0 : i32
    %c0_i32_1 = arith.constant 0 : i32
    return %c0_i32, %c0_i32_0 : i32, i32
  }
  func.func @transform_4(%arg0: i32) -> (i32, i32) {
    %c0_i32 = arith.constant 0 : i32
    %c0_i32_0 = arith.constant 0 : i32
    %c0_i32_1 = arith.constant 0 : i32
    return %c0_i32, %c0_i32_0 : i32, i32
  }
  func.func @transform_5(%arg0: i32) -> (i32, i32) {
    %c0_i32 = arith.constant 0 : i32
    %c0_i32_0 = arith.constant 0 : i32
    return %arg0, %c0_i32 : i32, i32
  }
  func.func @transform_6(%arg0: i32) -> (i32, i32) {
    %c0_i32 = arith.constant 0 : i32
    %c0_i32_0 = arith.constant 0 : i32
    return %arg0, %c0_i32 : i32, i32
  }
}

</mosaic_0001>

<bundles_post_ra>
// kernel: tpu_custom_call.1
= control target key start
LH: loop header
LB: loop body
LE: loop exit
PB: predicated region body
PF: predicated region fallthrough
CT: control target
= control target key end

     0   :  { %11 = vsyncpa [#allocation3], 0  ;;  %s568_s0 = inlined_call_operand.hbm [shape: f32[8,32], index: 0, kind: input, shape index: {}]   ;;  %s569_s1 = inlined_call_operand.hbm [shape: f32[8,32], index: 1, kind: input, shape index: {}]   ;;  %s570_s2 = inlined_call_operand.hbm [shape: bf16[32,32], index: 2, kind: input, shape index: {}]   ;;  %s571_s3 = inlined_call_operand.hbm [shape: bf16[32,32], index: 3, kind: input, shape index: {}]   ;;  %s572_s4 = inlined_call_operand.vmem [shape: f32[6,32], index: 4, kind: input, shape index: {}]   ;;  %s573_s5 = inlined_call_operand.vmem [shape: f32[8,32], index: 5, kind: input, shape index: {}]   ;;  %s574_s6 = inlined_call_operand.hbm [shape: f32[8,64], index: 6, kind: output, shape index: {}]  }
   0x1   :  { %12 = vsyncpa [#allocation6], 0 }
   0x2   :  { %13 = vsyncpa [#allocation9], 0 }
   0x3   :  { %14 = vsyncpa [#allocation4], 0  ;;  %s450_s21 = smov [#allocation5]   ;;  %s451_s23 = smov [#allocation2]  }
   0x4   :  { %s31_s22 = sshll.u32 %s450_s21, 4  ;;  %s21_s24 = sshll.u32 %s451_s23, 4  ;;  %s32_s22 = int_to_ptr.vmem [resolvable:$true] %s31_s22  ;;  %s22_s24 = int_to_ptr.vmem [resolvable:$true] %s21_s24 }
   0x5   :  { %s332_s27 = scalar_lea.hbm %s569_s1, 128 }
   0x6   :  { %p333_p0 = scmp.ne.s32.totalorder %s569_s1, %s332_s27  ;;  %p336_p1 = scmp.lt.u32.totalorder %s332_s27, %s569_s1 }
   0x8   :  { %p338_p2 = pnand %p336_p1, %p333_p0 }
   0xa   :  { %341 = shalt.err (!%p338_p2)
}
   0xb   :  { %s342_s8 = scalar_lea.vmem %s32_s22, 128  ;;  %p347_p4 = scmp.lt.s32.totalorder %s32_s22, %s32_s22 }
   0xc   :  { %p343_p3 = scmp.ne.s32.totalorder %s32_s22, %s342_s8  ;;  %p348_p5 = scmp.lt.s32.totalorder %s342_s8, %s342_s8 }
   0xe   :  { %p349_p6 = por %p348_p5, %p347_p4 }
  0x10   :  { %p350_p7 = pnand %p349_p6, %p343_p3 }
  0x12   :  { %353 = shalt.err (!%p350_p7)
}
  0x13   :  { %34 = dma.hbm_to_vmem [thread:$0]  %s569_s1, 128, %s32_s22, [#allocation6]  }
  0x14   :  { %s354_s13 = scalar_lea.hbm %s568_s0, 128 }
  0x15   :  { %p355_p8 = scmp.ne.s32.totalorder %s568_s0, %s354_s13  ;;  %p358_p9 = scmp.lt.u32.totalorder %s354_s13, %s568_s0 }
  0x17   :  { %p360_p10 = pnand %p358_p9, %p355_p8 }
  0x19   :  { %363 = shalt.err (!%p360_p10)
}
  0x1a   :  { %s364_s18 = scalar_lea.vmem %s22_s24, 128  ;;  %p369_p12 = scmp.lt.s32.totalorder %s22_s24, %s22_s24 }
  0x1b   :  { %p365_p11 = scmp.ne.s32.totalorder %s22_s24, %s364_s18  ;;  %p370_p13 = scmp.lt.s32.totalorder %s364_s18, %s364_s18 }
  0x1d   :  { %p371_p0 = por %p370_p13, %p369_p12 }
  0x1f   :  { %p372_p1 = pnand %p371_p0, %p365_p11 }
  0x21   :  { %375 = shalt.err (!%p372_p1)
}
  0x22   :  { %24 = dma.hbm_to_vmem [thread:$0]  %s568_s0, 128, %s22_s24, [#allocation3]  }
  0x23   :  { %s452_s20 = smov [#allocation7]   ;;  %s376_s25 = scalar_lea.hbm %s570_s2, 256 }
  0x24   :  { %s40_s21 = sshll.u32 %s452_s20, 4  ;;  %p377_p2 = scmp.ne.s32.totalorder %s570_s2, %s376_s25  ;;  %s41_s21 = int_to_ptr.vmem [resolvable:$true] %s40_s21 }
  0x25   :  { %p380_p3 = scmp.lt.u32.totalorder %s376_s25, %s570_s2 }
  0x27   :  { %p382_p4 = pnand %p380_p3, %p377_p2 }
  0x29   :  { %385 = shalt.err (!%p382_p4)
}
  0x2a   :  { %s386_s30 = scalar_lea.vmem %s41_s21, 256  ;;  %p391_p6 = scmp.lt.s32.totalorder %s41_s21, %s41_s21 }
  0x2b   :  { %p387_p5 = scmp.ne.s32.totalorder %s41_s21, %s386_s30  ;;  %p392_p7 = scmp.lt.s32.totalorder %s386_s30, %s386_s30 }
  0x2d   :  { %p393_p8 = por %p392_p7, %p391_p6 }
  0x2f   :  { %p394_p9 = pnand %p393_p8, %p387_p5 }
  0x31   :  { %397 = shalt.err (!%p394_p9)
}
  0x32   :  { %s453_s0 = smov 64   ;;  %s454_s24 = smov 4  }
  0x33   :  { %46 = dma.hbm_to_vmem [thread:$0]  %s570_s2, 256, %s41_s21, [#allocation6], %s453_s0, %s453_s0, %s454_s24  }
  0x34   :  { %s455_s9 = smov [#allocation8]   ;;  %s398_s13 = scalar_lea.hbm %s571_s3, 256 }
  0x35   :  { %s52_s10 = sshll.u32 %s455_s9, 4  ;;  %p399_p10 = scmp.ne.s32.totalorder %s571_s3, %s398_s13  ;;  %s53_s10 = int_to_ptr.vmem [resolvable:$true] %s52_s10 }
  0x36   :  { %p402_p11 = scmp.lt.u32.totalorder %s398_s13, %s571_s3 }
  0x38   :  { %p404_p12 = pnand %p402_p11, %p399_p10 }
  0x3a   :  { %407 = shalt.err (!%p404_p12)
}
  0x3b   :  { %s408_s18 = scalar_lea.vmem %s53_s10, 256  ;;  %p413_p0 = scmp.lt.s32.totalorder %s53_s10, %s53_s10 }
  0x3c   :  { %p409_p13 = scmp.ne.s32.totalorder %s53_s10, %s408_s18  ;;  %p414_p1 = scmp.lt.s32.totalorder %s408_s18, %s408_s18 }
  0x3e   :  { %p415_p2 = por %p414_p1, %p413_p0 }
  0x40   :  { %p416_p3 = pnand %p415_p2, %p409_p13 }
  0x42   :  { %419 = shalt.err (!%p416_p3)
}
  0x43   :  { %58 = dma.hbm_to_vmem [thread:$0]  %s571_s3, 256, %s53_s10, [#allocation9], %s453_s0, %s453_s0, %s454_s24  }
  0x44   :  { %442 = dma.done.wait [#allocation3], 128  }
  0x45   :  { %443 = vsyncadd [#allocation3], 4294967168 }
  0x46   :  { %444 = dma.done.wait [#allocation6], 384  }
  0x47   :  { %445 = vsyncadd [#allocation6], 4294966912 }
  0x48   :  { %446 = dma.done.wait [#allocation9], 256  }
  0x49   :  { %447 = vsyncadd [#allocation9], 4294967040  ;;  %v456_v0 = vmov 0.0   ;;  %vm457_vm0 = vmmov 0   ;;  %v322_v1 = vld [vmem:[#allocation7] sm:$0xff]   ;;  %v323_v2 = vld [vmem:[#allocation8] sm:$0xff]   ;;  %v87_v7 = vlaneseq }
  0x4a   :  { %296 = vmatprep.subr.bf16.mxu0 %v456_v0  ;;  %304 = vmatprep.subr.bf16.mxu1 %v456_v0  ;;  %v324_v3 = vld [vmem:[#allocation7 + $0x8] sm:$0xff]   ;;  %v325_v4 = vld [vmem:[#allocation8 + $0x8] sm:$0xff]   ;;  %vm103_vm1 = vcmask 261120   ;;  %v86_v10 = vld [vmem:[%s572_s4] sm:$0x3f]  ;;  %s458_s21 = smov 32  }
  0x4b   :  { %300 = vmatprep.mubr.msk.bf16.mxu0 %vm457_vm0, %v456_v0  ;;  %308 = vmatprep.mubr.msk.bf16.mxu1 %vm457_vm0, %v456_v0  ;;  %v76_v5 = vld [vmem:[#allocation5] sm:$0xff]  ;;  %v88_v8 = vshrl.u32 %v87_v7, 7  ;;  %v250_v58 = vld [vmem:[%s573_s5] sm:$0xff]  ;;  %s459_s22 = smov [#allocation10]   ;;  %vm265_vm2 = vcmask 523264  }
  0x4c   :  { %297 = vmatpush3.bf16.msra.mxu0 %v322_v1  ;;  %305 = vmatpush3.bf16.msra.mxu1 %v323_v2  ;;  %v77_v6 = vpack.c.bf16 %v76_v5, %v76_v5  ;;  %v257_v1 = vld [vmem:[#allocation2] sm:$0xff]  ;;  %s273_s23 = sshll.u32 %s459_s22, 4  ;;  %s274_s23 = int_to_ptr.vmem [resolvable:$true] %s273_s23 }
  0x4d   :  { %298 = vmatprep.subr.bf16.mxu0 %v456_v0  ;;  %306 = vmatprep.subr.bf16.mxu1 %v456_v0  ;;  %v89_v9 = vsub.s32 0, %v88_v8  ;;  %v149_v11 = vsub.s32 1, %v88_v8  ;;  %v228_v41 = vsub.s32 2, %v88_v8  ;;  %v239_v42 = vsub.s32 3, %v88_v8  ;;  %s420_s5 = scalar_lea.vmem %s274_s23, 128  ;;  %p425_p5 = scmp.lt.s32.totalorder %s274_s23, %s274_s23 }
  0x4e   :  { %v233_v43 = vsub.s32 4, %v88_v8  ;;  %v244_v44 = vsub.s32 5, %v88_v8  ;;  %p421_p4 = scmp.ne.s32.totalorder %s274_s23, %s420_s5  ;;  %p426_p6 = scmp.lt.s32.totalorder %s420_s5, %s420_s5 }
  0x4f   :  { %v90_v12 = vrot.slane %v86_v10, %v89_v9  ;;  %v150_v13 = vrot.slane %v86_v10, %v149_v11  ;;  %v229_v45 = vrot.slane %v86_v10, %v228_v41  ;;  %v240_v46 = vrot.slane %v86_v10, %v239_v42 }
  0x50   :  { %299 = vmatpush3.bf16.msra.mxu0 %v324_v3  ;;  %307 = vmatpush3.bf16.msra.mxu1 %v325_v4  ;;  %v234_v48 = vrot.slane %v86_v10, %v233_v43  ;;  %v245_v49 = vrot.slane %v86_v10, %v244_v44  ;;  %p427_p7 = por %p426_p6, %p425_p5 }
  0x52   :  { %p428_p8 = pnand %p427_p7, %p421_p4 }
  0x53   :  { %301 = vmatmul.mubr.msk.bf16.vlgmr.msra.gmra.mrb[0].mxu0 %vm103_vm1, %v77_v6  ;;  %309 = vmatmul.mubr.msk.bf16.vlgmr.msra.gmra.mrb[0].mxu1 %vm103_vm1, %v77_v6 }
 0x126   :  { %v141_v14 = vpop.f32.mrb[0].mxu0  ;;  %v197_v17 = vpop.f32.mrb[0].mxu1 }
 0x127   :  { %v142_v15 = vadd.f32 %v141_v14, %v90_v12  ;;  %v302_v16 = vpop.f32.mrb[1].mxu0  ;;  %v198_v18 = vadd.f32 %v197_v17, %v150_v13  ;;  %v310_v20 = vpop.f32.mrb[1].mxu1 }
 0x128   :  { %v144_v19 = vpop.f32.mrb[2].mxu0  ;;  %v200_v22 = vpop.f32.mrb[2].mxu1 }
 0x129   :  { %v303_v21 = vpop.f32.mrb[3].mxu0  ;;  %v203_v23 = vsel %vm103_vm1, %v142_v15, 0.0  ;;  %v311_v24 = vpop.f32.mrb[3].mxu1  ;;  %v206_v25 = vsel %vm103_vm1, %v198_v18, 0.0 }
 0x12a   :  { %204 = vadd.xlane.f32.xlu0 %v203_v23 }
 0x12e   :  { %207 = vadd.xlane.f32.xlu0 %v206_v25 }
 0x1b7   :  { %v205_v26 = vpop.xlane.xlu0 %204 }
 0x1bb   :  { %v208_v27 = vpop.xlane.xlu0 %207 }
 0x1bc   :  { %v209_v28 = vadd.f32 %v208_v27, %v205_v26 }
 0x1be   :  { %v210_v29 = vmul.f32 0.015625, %v209_v28 }
 0x1c0   :  { %v211_v30 = vsub.f32 %v142_v15, %v210_v29  ;;  %v212_v31 = vsub.f32 %v198_v18, %v210_v29 }
 0x1c2   :  { %v213_v32 = vmul.f32 %v211_v30, %v211_v30  ;;  %v217_v34 = vmul.f32 %v212_v31, %v212_v31 }
 0x1c4   :  { %v214_v33 = vsel %vm103_vm1, %v213_v32, 0.0  ;;  %v218_v35 = vsel %vm103_vm1, %v217_v34, 0.0 }
 0x1c5   :  { %215 = vadd.xlane.f32.xlu1 %v214_v33 }
 0x1c9   :  { %219 = vadd.xlane.f32.xlu1 %v218_v35 }
 0x252   :  { %v216_v36 = vpop.xlane.xlu1 %215 }
 0x256   :  { %v220_v37 = vpop.xlane.xlu1 %219 }
 0x257   :  { %v221_v38 = vadd.f32 %v220_v37, %v216_v36 }
 0x259   :  { %v222_v39 = vmul.f32 0.015625, %v221_v38 }
 0x25b   :  { %v223_v40 = vadd.f32 1e-05, %v222_v39 }
 0x25d   :  { %326 = vrsqrt.f32 %v223_v40 }
 0x267   :  { %v327_v47 = vpop.eup %326 }
 0x268   :  { %v225_v50 = vmul.f32 %v327_v47, %v211_v30  ;;  %v236_v51 = vmul.f32 %v327_v47, %v212_v31 }
 0x26a   :  { %v230_v52 = vmul.f32 %v229_v45, %v225_v50  ;;  %v241_v53 = vmul.f32 %v240_v46, %v236_v51 }
 0x26c   :  { %v235_v54 = vadd.f32 %v234_v48, %v230_v52  ;;  %v246_v55 = vadd.f32 %v245_v49, %v241_v53 }
 0x26e   :  { %v247_v56 = vmax.f32 %v235_v54, 0.0  ;;  %v248_v57 = vmax.f32 %v246_v55, 0.0 }
 0x270   :  { %v249_v59 = vsub.f32 %v247_v56, %v248_v57 }
 0x272   :  { %v251_v60 = vadd.f32 %v250_v58, %v249_v59 }
 0x274   :  { %v252_v61 = vsub.f32 0.0, %v251_v60 }
 0x276   :  { %v253_v62 = vmul.f32 1.442695, %v252_v61 }
 0x278   :  { %328 = vpow2.f32 %v253_v62 }
 0x282   :  { %v329_v63 = vpop.eup %328 }
 0x283   :  { %v255_v0 = vadd.f32 1.0, %v329_v63 }
 0x285   :  { %330 = vrcp.f32 %v255_v0 }
 0x28f   :  { %v331_v2 = vpop.eup %330 }
 0x290   :  { %v258_v3 = vmul.f32 %v331_v2, %v257_v1 }
 0x292   :  { %v259_v4 = vsub.f32 %v257_v1, %v258_v3 }
 0x294   :  { %261 = vrot.lane.b32.xlu0 %v259_v4, %s458_s21 }
 0x306   :  { %v262_v5 = vpop.permute.xlu0 %261 }
 0x307   :  { %v264_v6 = vsel %vm103_vm1, %v258_v3, %v262_v5 }
 0x308   :  { %266 = vst.msk [vmem:[#allocation10] sm:$0xff] %vm265_vm2, %v264_v6 }
 0x309   :  { %431 = shalt.err (!%p428_p8)
}
 0x30a   :  { %s432_s27 = scalar_lea.hbm %s574_s6, 128 }
 0x30b   :  { %p433_p9 = scmp.ne.s32.totalorder %s574_s6, %s432_s27  ;;  %p436_p10 = scmp.lt.u32.totalorder %s432_s27, %s574_s6 }
 0x30d   :  { %p438_p11 = pnand %p436_p10, %p433_p9 }
 0x30f   :  { %441 = shalt.err (!%p438_p11)
}
 0x310   :  { %276 = dma.vmem_to_hbm [thread:$0]  %s274_s23, 128, %s574_s6, [#allocation4]  }
 0x311   :  { %448 = dma.done.wait [#allocation4], 128  }
 0x312   :  { %449 = vsyncadd [#allocation4], 4294967168 }
 0x313   :  { %280 = vsyncpa [#allocation3], 1 }
 0x314   :  { %281 = vsyncpa [#allocation6], 1 }
 0x315   :  { %282 = vsyncpa [#allocation9], 1 }
 0x316   :  { %283 = vsyncpa [#allocation4], 1 }

</bundles_post_ra>
